<compile_context>
chip_gen: v7x
topology: tpu7x:2x2x1
jax: 0.10.0
libtpu: 0.0.40
codegen_flags: <defaults>
</compile_context>

<pallas_src>
import jax
import jax.numpy as jnp
from jax.experimental import pallas as pl
from jax.experimental.pallas import tpu as pltpu

EMBED_DIM = 256
TIMESTEPS = 1000.0


def time_embedder_kernel(t_ref, invf_ref, w1_ref, b1_ref, w2_ref, b2_ref, o_ref):
    # --- sinusoidal encoding (all f32 on the VPU/EUP; v5e-safe) ---
    t = t_ref[...] / TIMESTEPS                           # (tb, 1) f32
    arg = t * invf_ref[...]                              # (tb, D/2) via broadcast
    # [sin | cos] concat lands exactly on the 128-lane boundary -> no XLU shuffle.
    enc = jnp.concatenate([jnp.sin(arg), jnp.cos(arg)], axis=-1)   # (tb, D) f32

    # --- Linear 1: single fused (tb,256)x(256,256) dot.  Weights are bf16 in
    # HBM (halved DMA) but upcast to f32 for the matmul -> tight numerics. ---
    w1 = w1_ref[...].astype(jnp.float32)
    h = jnp.dot(enc, w1, preferred_element_type=jnp.float32) + b1_ref[...]

    # --- SiLU in f32 ---
    h = h * jax.nn.sigmoid(h)

    # --- Linear 2 ---
    w2 = w2_ref[...].astype(jnp.float32)
    out = jnp.dot(h, w2, preferred_element_type=jnp.float32) + b2_ref[...]
    o_ref[...] = out.astype(o_ref.dtype)


def prepare_params(inv_freq, w1, b1, w2, b2):
    """One-time parameter preparation (do this at init, NOT per call).

    Weights are stored bf16 (halves the dominant HBM DMA bytes); biases and
    inv_freq stay f32 and are reshaped to 2-D lane-aligned rows.
    w1, w2 are (in, out); b1, b2 are (D,).
    """
    D = EMBED_DIM
    H = D // 2
    return dict(
        inv_freq=inv_freq.astype(jnp.float32).reshape(1, H),
        w1=w1.astype(jnp.bfloat16),
        b1=b1.astype(jnp.float32).reshape(1, D),
        w2=w2.astype(jnp.bfloat16),
        b2=b2.astype(jnp.float32).reshape(1, D),
    )


def time_embedder(t, params):
    """t: (B,) f32 timesteps -> (B, EMBED_DIM) f32 embedding."""
    B = t.shape[0]
    D = EMBED_DIM
    H = D // 2

    t2 = t.astype(jnp.float32).reshape(B, 1)

    # Row tiling: full batch when small; 256-row parallel tiles when the
    # batched-timestep count is large (fills the MXU, engages v7x's 2nd TC).
    if B >= 512 and B % 256 == 0:
        tb = 256
    else:
        tb = B
    grid = (B // tb,)

    return pl.pallas_call(
        time_embedder_kernel,
        out_shape=jax.ShapeDtypeStruct((B, D), jnp.float32),
        grid=grid,
        in_specs=[
            pl.BlockSpec((tb, 1), lambda i: (i, 0)),     # t rows
            pl.BlockSpec((1, H), lambda i: (0, 0)),      # inv_freq (resident)
            pl.BlockSpec((D, D), lambda i: (0, 0)),      # w1 (bf16, resident)
            pl.BlockSpec((1, D), lambda i: (0, 0)),      # b1
            pl.BlockSpec((D, D), lambda i: (0, 0)),      # w2 (bf16, resident)
            pl.BlockSpec((1, D), lambda i: (0, 0)),      # b2
        ],
        out_specs=pl.BlockSpec((tb, D), lambda i: (i, 0)),
        compiler_params=pltpu.CompilerParams(
            dimension_semantics=("parallel",)),
    )(t2, params["inv_freq"], params["w1"], params["b1"],
      params["w2"], params["b2"])


def reference(t, inv_freq, w1, b1, w2, b2):
    # Pure-JAX f32 reference mirroring the PyTorch module exactly.
    t = t.astype(jnp.float32) / TIMESTEPS
    arg = t[..., None] * inv_freq                        # (B, D/2)
    enc = jnp.concatenate([jnp.sin(arg), jnp.cos(arg)], axis=-1)
    h = enc @ w1 + b1
    h = h * jax.nn.sigmoid(h)
    return h @ w2 + b2


if __name__ == "__main__":
    B = 8
    D = EMBED_DIM

    key = jax.random.PRNGKey(0)
    k_t, k_w1, k_b1, k_w2, k_b2 = jax.random.split(key, 5)

    # Deterministic synthetic parameters (PyTorch Linear W is (out,in); stored here as (in,out)).
    inv_freq = 1.0 / (10000.0 ** (jnp.arange(0, D, 2, dtype=jnp.float32) / D))  # (D/2,)
    lim = 1.0 / jnp.sqrt(jnp.float32(D))
    w1 = jax.random.uniform(k_w1, (D, D), jnp.float32, -lim, lim)
    b1 = jax.random.uniform(k_b1, (D,), jnp.float32, -lim, lim)
    w2 = jax.random.uniform(k_w2, (D, D), jnp.float32, -lim, lim)
    b2 = jax.random.uniform(k_b2, (D,), jnp.float32, -lim, lim)

    # Timesteps in [0, 1000)
    t = jax.random.uniform(k_t, (B,), jnp.float32, 0.0, 1000.0)

    # One-time parameter prep (bf16 weight cast happens here, not per call).
    params = prepare_params(inv_freq, w1, b1, w2, b2)

    out = time_embedder(t, params)
    out = jax.block_until_ready(out)

    ref = reference(t, inv_freq, w1, b1, w2, b2)
    assert out.shape == (B, D), out.shape
    # Only bf16 weight *storage* rounding separates kernel from the f32 reference.
    max_err = float(jnp.max(jnp.abs(out - ref)))
    assert jnp.allclose(out, ref, atol=5e-3, rtol=5e-3), max_err

    print("KERNEL_OK")
</pallas_src>

<mosaic_0001>
module attributes {stable_mosaic.version = 11 : i64} {
  func.func @time_embedder_kernel(%arg0: i32, %arg1: memref<8x1xf32, #tpu.memory_space<vmem>>, %arg2: memref<1x128xf32, #tpu.memory_space<vmem>>, %arg3: memref<256x256xbf16, #tpu.memory_space<vmem>>, %arg4: memref<1x256xf32, #tpu.memory_space<vmem>>, %arg5: memref<256x256xbf16, #tpu.memory_space<vmem>>, %arg6: memref<1x256xf32, #tpu.memory_space<vmem>>, %arg7: memref<8x256xf32, #tpu.memory_space<vmem>>) attributes {dimension_semantics = [#tpu.dimension_semantics<parallel>], iteration_bounds = array<i64: 1>, scalar_prefetch = 0 : i64, scratch_operands = 0 : i64, tpu.core_type = #tpu.core_type<tc>, window_params = [{transform_indices = @transform_0, window_bounds = array<i64: 8, 1>}, {pipeline_mode = #tpu.pipeline_mode<synchronous>, transform_indices = @transform_1, window_bounds = array<i64: 1, 128>}, {pipeline_mode = #tpu.pipeline_mode<synchronous>, transform_indices = @transform_2, window_bounds = array<i64: 256, 256>}, {pipeline_mode = #tpu.pipeline_mode<synchronous>, transform_indices = @transform_3, window_bounds = array<i64: 1, 256>}, {pipeline_mode = #tpu.pipeline_mode<synchronous>, transform_indices = @transform_4, window_bounds = array<i64: 256, 256>}, {pipeline_mode = #tpu.pipeline_mode<synchronous>, transform_indices = @transform_5, window_bounds = array<i64: 1, 256>}, {transform_indices = @transform_6, window_bounds = array<i64: 8, 256>}]} {
    %c0 = arith.constant 0 : index
    %c0_0 = arith.constant 0 : index
    %0 = vector.load %arg1[%c0, %c0_0] : memref<8x1xf32, #tpu.memory_space<vmem>>, vector<8x1xf32>
    %cst = arith.constant 1.000000e+03 : f32
    %1 = vector.broadcast %cst : f32 to vector<8x1xf32>
    %2 = arith.divf %0, %1 : vector<8x1xf32>
    %c0_1 = arith.constant 0 : index
    %c0_2 = arith.constant 0 : index
    %3 = vector.load %arg2[%c0_1, %c0_2] : memref<1x128xf32, #tpu.memory_space<vmem>>, vector<1x128xf32>
    %4 = vector.broadcast %2 : vector<8x1xf32> to vector<8x128xf32>
    %5 = vector.broadcast %3 : vector<1x128xf32> to vector<8x128xf32>
    %6 = arith.mulf %4, %5 : vector<8x128xf32>
    %7 = math.sin %6 : vector<8x128xf32>
    %8 = math.cos %6 : vector<8x128xf32>
    %9 = tpu.concatenate %7, %8 in 1 : vector<8x128xf32>, vector<8x128xf32> -> vector<8x256xf32>
    %c0_3 = arith.constant 0 : index
    %c0_4 = arith.constant 0 : index
    %10 = vector.load %arg3[%c0_3, %c0_4] : memref<256x256xbf16, #tpu.memory_space<vmem>>, vector<256x256xbf16>
    %11 = arith.extf %10 : vector<256x256xbf16> to vector<256x256xf32>
    %cst_5 = arith.constant dense<0.000000e+00> : vector<8x256xf32>
    %12 = tpu.matmul %9, %11, %cst_5 {dimension_numbers = #tpu.dot_dimension_numbers<[1], [0], [0], [1], [0, 0, 1, 1], [], []>} : vector<8x256xf32>, vector<256x256xf32>, vector<8x256xf32> -> vector<8x256xf32>
    %c0_6 = arith.constant 0 : index
    %c0_7 = arith.constant 0 : index
    %13 = vector.load %arg4[%c0_6, %c0_7] : memref<1x256xf32, #tpu.memory_space<vmem>>, vector<1x256xf32>
    %14 = vector.broadcast %13 : vector<1x256xf32> to vector<8x256xf32>
    %15 = arith.addf %12, %14 : vector<8x256xf32>
    %16 = arith.negf %15 : vector<8x256xf32>
    %17 = math.exp %16 : vector<8x256xf32>
    %cst_8 = arith.constant 1.000000e+00 : f32
    %18 = vector.broadcast %cst_8 : f32 to vector<8x256xf32>
    %19 = arith.addf %18, %17 : vector<8x256xf32>
    %20 = arith.divf %18, %19 : vector<8x256xf32>
    %21 = arith.mulf %15, %20 : vector<8x256xf32>
    %c0_9 = arith.constant 0 : index
    %c0_10 = arith.constant 0 : index
    %22 = vector.load %arg5[%c0_9, %c0_10] : memref<256x256xbf16, #tpu.memory_space<vmem>>, vector<256x256xbf16>
    %23 = arith.extf %22 : vector<256x256xbf16> to vector<256x256xf32>
    %cst_11 = arith.constant dense<0.000000e+00> : vector<8x256xf32>
    %24 = tpu.matmul %21, %23, %cst_11 {dimension_numbers = #tpu.dot_dimension_numbers<[1], [0], [0], [1], [0, 0, 1, 1], [], []>} : vector<8x256xf32>, vector<256x256xf32>, vector<8x256xf32> -> vector<8x256xf32>
    %c0_12 = arith.constant 0 : index
    %c0_13 = arith.constant 0 : index
    %25 = vector.load %arg6[%c0_12, %c0_13] : memref<1x256xf32, #tpu.memory_space<vmem>>, vector<1x256xf32>
    %26 = vector.broadcast %25 : vector<1x256xf32> to vector<8x256xf32>
    %27 = arith.addf %24, %26 : vector<8x256xf32>
    %c0_14 = arith.constant 0 : index
    %c0_15 = arith.constant 0 : index
    %28 = vector.load %arg7[%c0_14, %c0_15] : memref<8x256xf32, #tpu.memory_space<vmem>>, vector<8x256xf32>
    tpu.vector_store %arg7[%c0_14, %c0_15], %27 {strides = array<i32>} : memref<8x256xf32, #tpu.memory_space<vmem>>, vector<8x256xf32>,
    return
  }
  func.func @transform_0(%arg0: i32) -> (i32, i32) {
    %c0_i32 = arith.constant 0 : i32
    %c0_i32_0 = arith.constant 0 : i32
    return %arg0, %c0_i32 : i32, i32
  }
  func.func @transform_1(%arg0: i32) -> (i32, i32) {
    %c0_i32 = arith.constant 0 : i32
    %c0_i32_0 = arith.constant 0 : i32
    %c0_i32_1 = arith.constant 0 : i32
    return %c0_i32, %c0_i32_0 : i32, i32
  }
  func.func @transform_2(%arg0: i32) -> (i32, i32) {
    %c0_i32 = arith.constant 0 : i32
    %c0_i32_0 = arith.constant 0 : i32
    %c0_i32_1 = arith.constant 0 : i32
    return %c0_i32, %c0_i32_0 : i32, i32
  }
  func.func @transform_3(%arg0: i32) -> (i32, i32) {
    %c0_i32 = arith.constant 0 : i32
    %c0_i32_0 = arith.constant 0 : i32
    %c0_i32_1 = arith.constant 0 : i32
    return %c0_i32, %c0_i32_0 : i32, i32
  }
  func.func @transform_4(%arg0: i32) -> (i32, i32) {
    %c0_i32 = arith.constant 0 : i32
    %c0_i32_0 = arith.constant 0 : i32
    %c0_i32_1 = arith.constant 0 : i32
    return %c0_i32, %c0_i32_0 : i32, i32
  }
  func.func @transform_5(%arg0: i32) -> (i32, i32) {
    %c0_i32 = arith.constant 0 : i32
    %c0_i32_0 = arith.constant 0 : i32
    %c0_i32_1 = arith.constant 0 : i32
    return %c0_i32, %c0_i32_0 : i32, i32
  }
  func.func @transform_6(%arg0: i32) -> (i32, i32) {
    %c0_i32 = arith.constant 0 : i32
    %c0_i32_0 = arith.constant 0 : i32
    return %arg0, %c0_i32 : i32, i32
  }
}

</mosaic_0001>

<bundles_post_ra>
// kernel: tpu_custom_call.1
= control target key start
LH: loop header
LB: loop body
LE: loop exit
PB: predicated region body
PF: predicated region fallthrough
CT: control target
= control target key end

     0   :  { %11 = vsyncpa [#allocation3], 0  ;;  %s1181_s0 = inlined_call_operand.vmem [shape: f32[8,1], index: 0, kind: input, shape index: {}]   ;;  %s1182_s1 = inlined_call_operand.vmem [shape: f32[1,128], index: 1, kind: input, shape index: {}]   ;;  %s1183_s2 = inlined_call_operand.hbm [shape: bf16[256,256], index: 2, kind: input, shape index: {}]   ;;  %s1184_s3 = inlined_call_operand.vmem [shape: f32[1,256], index: 3, kind: input, shape index: {}]   ;;  %s1185_s4 = inlined_call_operand.hbm [shape: bf16[256,256], index: 4, kind: input, shape index: {}]   ;;  %s1186_s5 = inlined_call_operand.vmem [shape: f32[1,256], index: 5, kind: input, shape index: {}]   ;;  %s1187_s6 = inlined_call_operand.hbm [shape: f32[8,256], index: 6, kind: output, shape index: {}]  }
   0x1   :  { %12 = vsyncpa [#allocation6], 0 }
   0x2   :  { %13 = vsyncpa [#allocation4], 0  ;;  %s1065_s21 = smov [#allocation2]   ;;  %s993_s25 = scalar_lea.hbm %s1183_s2, 4096 }
   0x3   :  { %s23_s22 = sshll.u32 %s1065_s21, 4  ;;  %p994_p0 = scmp.ne.s32.totalorder %s1183_s2, %s993_s25  ;;  %s24_s22 = int_to_ptr.vmem [resolvable:$true] %s23_s22 }
   0x4   :  { %p997_p1 = scmp.lt.u32.totalorder %s993_s25, %s1183_s2 }
   0x6   :  { %p999_p2 = pnand %p997_p1, %p994_p0 }
   0x8   :  { %1002 = shalt.err (!%p999_p2)
}
   0x9   :  { %s1003_s30 = scalar_lea.vmem %s24_s22, 4096  ;;  %p1008_p4 = scmp.lt.s32.totalorder %s24_s22, %s24_s22 }
   0xa   :  { %p1004_p3 = scmp.ne.s32.totalorder %s24_s22, %s1003_s30  ;;  %p1009_p5 = scmp.lt.s32.totalorder %s1003_s30, %s1003_s30 }
   0xc   :  { %p1010_p6 = por %p1009_p5, %p1008_p4 }
   0xe   :  { %p1011_p7 = pnand %p1010_p6, %p1004_p3 }
  0x10   :  { %1014 = shalt.err (!%p1011_p7)
}
  0x11   :  { %s1066_s7 = smov 128   ;;  %s1067_s8 = smov 8  }
  0x12   :  { %29 = dma.hbm_to_vmem [thread:$0]  %s1183_s2, 4096, %s24_s22, [#allocation3], %s1066_s7, %s1066_s7, %s1067_s8  }
  0x13   :  { %s1068_s11 = smov [#allocation5]   ;;  %s1015_s15 = scalar_lea.hbm %s1185_s4, 4096 }
  0x14   :  { %s37_s12 = sshll.u32 %s1068_s11, 4  ;;  %p1016_p8 = scmp.ne.s32.totalorder %s1185_s4, %s1015_s15  ;;  %s38_s12 = int_to_ptr.vmem [resolvable:$true] %s37_s12 }
  0x15   :  { %p1019_p9 = scmp.lt.u32.totalorder %s1015_s15, %s1185_s4 }
  0x17   :  { %p1021_p10 = pnand %p1019_p9, %p1016_p8 }
  0x19   :  { %1024 = shalt.err (!%p1021_p10)
}
  0x1a   :  { %s1025_s20 = scalar_lea.vmem %s38_s12, 4096  ;;  %p1030_p12 = scmp.lt.s32.totalorder %s38_s12, %s38_s12 }
  0x1b   :  { %p1026_p11 = scmp.ne.s32.totalorder %s38_s12, %s1025_s20  ;;  %p1031_p13 = scmp.lt.s32.totalorder %s1025_s20, %s1025_s20 }
  0x1d   :  { %p1032_p0 = por %p1031_p13, %p1030_p12 }
  0x1f   :  { %p1033_p1 = pnand %p1032_p0, %p1026_p11 }
  0x21   :  { %1036 = shalt.err (!%p1033_p1)
}
  0x22   :  { %43 = dma.hbm_to_vmem [thread:$0]  %s1185_s4, 4096, %s38_s12, [#allocation6], %s1066_s7, %s1066_s7, %s1067_s8  }
  0x23   :  { %1059 = dma.done.wait [#allocation3], 4096  }
  0x24   :  { %1060 = vsyncadd [#allocation3], 4294963200 }
  0x25   :  { %1061 = dma.done.wait [#allocation6], 4096  }
  0x26   :  { %1062 = vsyncadd [#allocation6], 4294963200  ;;  %v1069_v0 = vmov 0   ;;  %v52_v1 = vld [vmem:[%s1181_s0] sm:$0xff]  ;;  %v888_v5 = vld [vmem:[#allocation2 + $0x14] ss:$8 sps:$4 sm:$0xff]  }
  0x27   :  { %884 = vset.pattern.permute.xlu0 %v1069_v0  ;;  %v54_v2 = vmul.f32 0.001, %v52_v1  ;;  %v885_v3 = vld [vmem:[#allocation2 + $0x4] ss:$8 sps:$4 sm:$0xff]   ;;  %v887_v4 = vld [vmem:[#allocation2] ss:$8 sps:$4 sm:$0xff]  }
  0x28   :  { %677 = vmatprep.subr.bf16.mxu0 %v885_v3  ;;  %v890_v6 = vld [vmem:[#allocation2 + $0x10] ss:$8 sps:$4 sm:$0xff]   ;;  %v891_v7 = vld [vmem:[#allocation2 + $0x24] ss:$8 sps:$4 sm:$0xff]   ;;  %v893_v8 = vld [vmem:[#allocation2 + $0x20] ss:$8 sps:$4 sm:$0xff]  }
  0x29   :  { %58 = vperm.xlu0 %884, %v54_v2   ;;  %679 = vmatpush1.bf16.msra.mxu0 %v887_v4  ;;  %v894_v9 = vld [vmem:[#allocation2 + $0x34] ss:$8 sps:$4 sm:$0xff]   ;;  %v896_v10 = vld [vmem:[#allocation2 + $0x30] ss:$8 sps:$4 sm:$0xff]   ;;  %v897_v11 = vld [vmem:[#allocation2 + $0x44] ss:$8 sps:$4 sm:$0xff]  }
  0x2a   :  { %681 = vmatprep.subr.bf16.mxu0 %v888_v5  ;;  %v899_v12 = vld [vmem:[#allocation2 + $0x40] ss:$8 sps:$4 sm:$0xff]   ;;  %v900_v13 = vld [vmem:[#allocation2 + $0x54] ss:$8 sps:$4 sm:$0xff]   ;;  %v902_v14 = vld [vmem:[#allocation2 + $0x50] ss:$8 sps:$4 sm:$0xff]  }
  0x2b   :  { %v903_v15 = vld [vmem:[#allocation2 + $0x64] ss:$8 sps:$4 sm:$0xff]   ;;  %v905_v16 = vld [vmem:[#allocation2 + $0x60] ss:$8 sps:$4 sm:$0xff]   ;;  %v906_v17 = vld [vmem:[#allocation2 + $0x74] ss:$8 sps:$4 sm:$0xff]  }
  0x2c   :  { %v908_v18 = vld [vmem:[#allocation2 + $0x70] ss:$8 sps:$4 sm:$0xff]   ;;  %v909_v19 = vld [vmem:[#allocation2 + $0x84] ss:$8 sps:$4 sm:$0xff]   ;;  %v911_v20 = vld [vmem:[#allocation2 + $0x80] ss:$8 sps:$4 sm:$0xff]  }
  0x2d   :  { %683 = vmatpush1.bf16.msra.mxu0 %v890_v6  ;;  %v912_v21 = vld [vmem:[#allocation2 + $0x94] ss:$8 sps:$4 sm:$0xff]   ;;  %v914_v22 = vld [vmem:[#allocation2 + $0x90] ss:$8 sps:$4 sm:$0xff]   ;;  %v915_v23 = vld [vmem:[#allocation2 + $0xa4] ss:$8 sps:$4 sm:$0xff]  }
  0x2e   :  { %685 = vmatprep.subr.bf16.mxu0 %v891_v7  ;;  %v917_v24 = vld [vmem:[#allocation2 + $0xa0] ss:$8 sps:$4 sm:$0xff]   ;;  %v918_v25 = vld [vmem:[#allocation2 + $0xb4] ss:$8 sps:$4 sm:$0xff]   ;;  %v920_v26 = vld [vmem:[#allocation2 + $0xb0] ss:$8 sps:$4 sm:$0xff]  }
  0x2f   :  { %v921_v27 = vld [vmem:[#allocation2 + $0xc4] ss:$8 sps:$4 sm:$0xff]   ;;  %v923_v28 = vld [vmem:[#allocation2 + $0xc0] ss:$8 sps:$4 sm:$0xff]   ;;  %v924_v29 = vld [vmem:[#allocation2 + $0xd4] ss:$8 sps:$4 sm:$0xff]  }
  0x30   :  { %v926_v30 = vld [vmem:[#allocation2 + $0xd0] ss:$8 sps:$4 sm:$0xff]   ;;  %v927_v31 = vld [vmem:[#allocation2 + $0xe4] ss:$8 sps:$4 sm:$0xff]   ;;  %v929_v32 = vld [vmem:[#allocation2 + $0xe0] ss:$8 sps:$4 sm:$0xff]  }
  0x31   :  { %687 = vmatpush1.bf16.msra.mxu0 %v893_v8  ;;  %v930_v33 = vld [vmem:[#allocation2 + $0xf4] ss:$8 sps:$4 sm:$0xff]   ;;  %v932_v34 = vld [vmem:[#allocation2 + $0xf0] ss:$8 sps:$4 sm:$0xff]   ;;  %v933_v35 = vld [vmem:[#allocation5 + $0x4] ss:$8 sps:$4 sm:$0xff]  }
  0x32   :  { %689 = vmatprep.subr.bf16.mxu0 %v894_v9  ;;  %v935_v36 = vld [vmem:[#allocation5] ss:$8 sps:$4 sm:$0xff]   ;;  %v936_v37 = vld [vmem:[#allocation5 + $0x14] ss:$8 sps:$4 sm:$0xff]   ;;  %741 = vmatprep.subr.bf16.mxu1 %v933_v35  ;;  %v938_v38 = vld [vmem:[#allocation5 + $0x10] ss:$8 sps:$4 sm:$0xff]  }
  0x33   :  { %743 = vmatpush1.bf16.msra.mxu1 %v935_v36  ;;  %v939_v39 = vld [vmem:[#allocation5 + $0x24] ss:$8 sps:$4 sm:$0xff]   ;;  %v941_v40 = vld [vmem:[#allocation5 + $0x20] ss:$8 sps:$4 sm:$0xff]   ;;  %v942_v41 = vld [vmem:[#allocation5 + $0x34] ss:$8 sps:$4 sm:$0xff]  }
  0x34   :  { %745 = vmatprep.subr.bf16.mxu1 %v936_v37  ;;  %v944_v42 = vld [vmem:[#allocation5 + $0x30] ss:$8 sps:$4 sm:$0xff]   ;;  %v945_v43 = vld [vmem:[#allocation5 + $0x44] ss:$8 sps:$4 sm:$0xff]   ;;  %v947_v44 = vld [vmem:[#allocation5 + $0x40] ss:$8 sps:$4 sm:$0xff]  }
  0x35   :  { %691 = vmatpush1.bf16.msra.mxu0 %v896_v10  ;;  %v948_v45 = vld [vmem:[#allocation5 + $0x54] ss:$8 sps:$4 sm:$0xff]   ;;  %v950_v46 = vld [vmem:[#allocation5 + $0x50] ss:$8 sps:$4 sm:$0xff]   ;;  %v951_v47 = vld [vmem:[#allocation5 + $0x64] ss:$8 sps:$4 sm:$0xff]  }
  0x36   :  { %693 = vmatprep.subr.bf16.mxu0 %v897_v11  ;;  %v953_v48 = vld [vmem:[#allocation5 + $0x60] ss:$8 sps:$4 sm:$0xff]   ;;  %v954_v49 = vld [vmem:[#allocation5 + $0x74] ss:$8 sps:$4 sm:$0xff]   ;;  %v956_v50 = vld [vmem:[#allocation5 + $0x70] ss:$8 sps:$4 sm:$0xff]  }
  0x37   :  { %747 = vmatpush1.bf16.msra.mxu1 %v938_v38  ;;  %v665_v51 = vld [vmem:[%s1182_s1] ss:$0 sm:$0xff]  ;;  %v1070_v1 = vmov 2102212464   ;;  %v1071_v3 = vmov 920167782  }
  0x38   :  { %749 = vmatprep.subr.bf16.mxu1 %v939_v39  ;;  %v1072_v7 = vmov 1326507024   ;;  %v1073_v9 = vmov 683565275   ;;  %v1074_v11 = vmov 2475754826  }
  0x39   :  { %695 = vmatpush1.bf16.msra.mxu0 %v899_v12  ;;  %s1076_s26 = smov [#allocation7]  }
  0x3a   :  { %697 = vmatprep.subr.bf16.mxu0 %v900_v13  ;;  %s655_s27 = sshll.u32 %s1076_s26, 4  ;;  %s656_s27 = int_to_ptr.vmem [resolvable:$true] %s655_s27 }
  0x3b   :  { %751 = vmatpush1.bf16.msra.mxu1 %v941_v40  ;;  %s1037_s28 = scalar_lea.vmem %s656_s27, 256  ;;  %p1042_p3 = scmp.lt.s32.totalorder %s656_s27, %s656_s27 }
  0x3c   :  { %753 = vmatprep.subr.bf16.mxu1 %v942_v41  ;;  %p1038_p2 = scmp.ne.s32.totalorder %s656_s27, %s1037_s28  ;;  %p1043_p4 = scmp.lt.s32.totalorder %s1037_s28, %s1037_s28 }
  0x3d   :  { %699 = vmatpush1.bf16.msra.mxu0 %v902_v14  ;;  %v1075_v14 = vmov 2131351028  }
  0x3e   :  { %701 = vmatprep.subr.bf16.mxu0 %v903_v15  ;;  %p1044_p5 = por %p1043_p4, %p1042_p3 }
  0x3f   :  { %755 = vmatpush1.bf16.msra.mxu1 %v944_v42 }
  0x40   :  { %757 = vmatprep.subr.bf16.mxu1 %v945_v43  ;;  %p1045_p6 = pnand %p1044_p5, %p1038_p2 }
  0x41   :  { %703 = vmatpush1.bf16.msra.mxu0 %v905_v16 }
  0x42   :  { %705 = vmatprep.subr.bf16.mxu0 %v906_v17 }
  0x43   :  { %759 = vmatpush1.bf16.msra.mxu1 %v947_v44 }
  0x44   :  { %761 = vmatprep.subr.bf16.mxu1 %v948_v45 }
  0x45   :  { %707 = vmatpush1.bf16.msra.mxu0 %v908_v18 }
  0x46   :  { %709 = vmatprep.subr.bf16.mxu0 %v909_v19 }
  0x47   :  { %763 = vmatpush1.bf16.msra.mxu1 %v950_v46 }
  0x48   :  { %765 = vmatprep.subr.bf16.mxu1 %v951_v47 }
  0x49   :  { %711 = vmatpush1.bf16.msra.mxu0 %v911_v20 }
  0x4a   :  { %713 = vmatprep.subr.bf16.mxu0 %v912_v21 }
  0x4b   :  { %767 = vmatpush1.bf16.msra.mxu1 %v953_v48 }
  0x4c   :  { %769 = vmatprep.subr.bf16.mxu1 %v954_v49 }
  0x4d   :  { %715 = vmatpush1.bf16.msra.mxu0 %v914_v22 }
  0x4e   :  { %717 = vmatprep.subr.bf16.mxu0 %v915_v23 }
  0x4f   :  { %771 = vmatpush1.bf16.msra.mxu1 %v956_v50 }
  0x51   :  { %719 = vmatpush1.bf16.msra.mxu0 %v917_v24 }
  0x52   :  { %721 = vmatprep.subr.bf16.mxu0 %v918_v25 }
  0x55   :  { %723 = vmatpush1.bf16.msra.mxu0 %v920_v26 }
  0x56   :  { %725 = vmatprep.subr.bf16.mxu0 %v921_v27 }
  0x59   :  { %727 = vmatpush1.bf16.msra.mxu0 %v923_v28 }
  0x5a   :  { %729 = vmatprep.subr.bf16.mxu0 %v924_v29 }
  0x5d   :  { %731 = vmatpush1.bf16.msra.mxu0 %v926_v30 }
  0x5e   :  { %733 = vmatprep.subr.bf16.mxu0 %v927_v31 }
  0x61   :  { %735 = vmatpush1.bf16.msra.mxu0 %v929_v32 }
  0x62   :  { %737 = vmatprep.subr.bf16.mxu0 %v930_v33 }
  0x65   :  { %739 = vmatpush1.bf16.msra.mxu0 %v932_v34 }
  0xa8   :  { %v59_v52 = vpop.permute.xlu0 %58 }
  0xa9   :  { %v1142_v53 = vmul.f32 %v665_v51, %v59_v52 }
  0xab   :  { %v71_v54 = vand.u32 2139095040, %v1142_v53  ;;  %v68_v55 = vand.u32 2147483647, %v1142_v53  ;;  %vm70_vm7 = vcmp.lt.s32.totalorder %v1142_v53, 0  ;;  %vm160_vm15 = vweird.f32 %v1142_v53 }
  0xad   :  { %v72_v56 = vshrl.u32 %v71_v54, 23  ;;  %v75_v58 = vand.u32 8388607, %v68_v55  ;;  %vm69_vm8 = vcmp.le.f32.partialorder %v68_v55, 0.7853982 }
  0xaf   :  { %v666_v57 = vadd.s32 4294967169, %v72_v56  ;;  %v76_v61 = vor.u32 8388608, %v75_v58 }
  0xb1   :  { %v78_v59 = vadd.s32 1, %v666_v57  ;;  %v116_v5 = vshll.u32 %v76_v61, 8 }
  0xb3   :  { %vm79_vm0 = vcmp.gt.s32.totalorder %v78_v59, 0 }
  0xb4   :  { %v80_v60 = vsel %vm79_vm0, %v78_v59, 0 }
  0xb5   :  { %v82_v62 = vand.u32 31, %v80_v60  ;;  %v81_v63 = vshrl.u32 %v80_v60, 5 }
  0xb7   :  { %v83_v0 = vsub.s32 32, %v82_v62  ;;  %v94_v2 = vshll.u32 %v1070_v1, %v82_v62  ;;  %v97_v4 = vshll.u32 %v1071_v3, %v82_v62  ;;  %v85_v10 = vshll.u32 %v1073_v9, %v82_v62 }
  0xb8   :  { %v88_v13 = vshll.u32 %v1074_v11, %v82_v62  ;;  %v91_v16 = vshll.u32 %v1075_v14, %v82_v62  ;;  %vm103_vm1 = vcmp.lt.s32.totalorder %v81_v63, 4  ;;  %vm100_vm2 = vcmp.lt.s32.totalorder %v81_v63, 1 }
  0xb9   :  { %v95_v6 = vshrl.u32 %v1071_v3, %v83_v0  ;;  %v98_v8 = vshrl.u32 %v1072_v7, %v83_v0  ;;  %v86_v12 = vshrl.u32 %v1074_v11, %v83_v0  ;;  %v89_v15 = vshrl.u32 %v1075_v14, %v83_v0 }
  0xba   :  { %v92_v17 = vshrl.u32 %v1070_v1, %v83_v0  ;;  %v84_v21 = vshrl.u32 %v1073_v9, %v83_v0  ;;  %vm101_vm3 = vcmp.lt.s32.totalorder %v81_v63, 2  ;;  %vm102_vm4 = vcmp.lt.s32.totalorder %v81_v63, 3 }
  0xbb   :  { %v96_v18 = vor.u32 %v95_v6, %v94_v2  ;;  %v99_v19 = vor.u32 %v98_v8, %v97_v4  ;;  %v87_v20 = vor.u32 %v86_v12, %v85_v10  ;;  %v90_v22 = vor.u32 %v89_v15, %v88_v13 }
  0xbc   :  { %v93_v23 = vor.u32 %v92_v17, %v91_v16 }
  0xbd   :  { %v109_v24 = vsel %vm103_vm1, %v96_v18, 920167782  ;;  %v113_v25 = vsel %vm103_vm1, %v99_v19, 1326507024  ;;  %v108_v27 = vsel %vm100_vm2, %v87_v20, %v90_v22  ;;  %v104_v30 = vsel %vm100_vm2, %v84_v21, %v87_v20 }
  0xbe   :  { %v105_v26 = vsel %vm103_vm1, %v93_v23, 2102212464  ;;  %v110_v28 = vsel %vm102_vm4, %v93_v23, %v109_v24  ;;  %v112_v29 = vsel %vm100_vm2, %v90_v22, %v93_v23  ;;  %v114_v33 = vsel %vm102_vm4, %v96_v18, %v113_v25  ;;  %v957_v23 = vld [vmem:[#allocation5 + $0x84] ss:$8 sps:$4 sm:$0xff]   ;;  %v959_v24 = vld [vmem:[#allocation5 + $0x80] ss:$8 sps:$4 sm:$0xff]  }
  0xbf   :  { %v106_v31 = vsel %vm102_vm4, %v90_v22, %v105_v26  ;;  %v111_v32 = vsel %vm101_vm3, %v108_v27, %v110_v28  ;;  %v115_v34 = vsel %vm101_vm3, %v112_v29, %v114_v33  ;;  %773 = vmatprep.subr.bf16.mxu1 %v957_v23  ;;  %v960_v25 = vld [vmem:[#allocation5 + $0x94] ss:$8 sps:$4 sm:$0xff]   ;;  %v962_v26 = vld [vmem:[#allocation5 + $0x90] ss:$8 sps:$4 sm:$0xff]   ;;  %v963_v27 = vld [vmem:[#allocation5 + $0xa4] ss:$8 sps:$4 sm:$0xff]  }
  0xc0   :  { %v1148_v35 = vmul.u32.u64.low %v116_v5, %v111_v32  ;;  %v1149_v36 = vmul.u32.u64.high %v116_v5, %v111_v32, %v1148_v35  ;;  %v1151_v37 = vmul.u32.u64.low %v116_v5, %v115_v34  ;;  %v1152_v38 = vmul.u32.u64.high %v116_v5, %v115_v34, %v1151_v37  ;;  %775 = vmatpush1.bf16.msra.mxu1 %v959_v24  ;;  %v965_v28 = vld [vmem:[#allocation5 + $0xa0] ss:$8 sps:$4 sm:$0xff]   ;;  %v966_v29 = vld [vmem:[#allocation5 + $0xb4] ss:$8 sps:$4 sm:$0xff]   ;;  %v974_v33 = vld [vmem:[#allocation5 + $0xd0] ss:$8 sps:$4 sm:$0xff]  }
  0xc1   :  { %v107_v39 = vsel %vm101_vm3, %v104_v30, %v106_v31  ;;  %777 = vmatprep.subr.bf16.mxu1 %v960_v25  ;;  %v969_v30 = vld [vmem:[#allocation5 + $0xc4] ss:$8 sps:$4 sm:$0xff]   ;;  %v971_v31 = vld [vmem:[#allocation5 + $0xc0] ss:$8 sps:$4 sm:$0xff]   ;;  %v972_v32 = vld [vmem:[#allocation5 + $0xd4] ss:$8 sps:$4 sm:$0xff]  }
  0xc2   :  { %v126_v40 = vadd.s32 1, %v1149_v36  ;;  %v123_v41 = vmul.u32 %v116_v5, %v107_v39  ;;  %vm125_vm5 = vc.u32 %v1152_v38, %v1148_v35  ;;  %v124_v54 = vadd.s32 %v1148_v35, %v1152_v38  ;;  %v975_v34 = vld [vmem:[#allocation5 + $0xe4] ss:$8 sps:$4 sm:$0xff]   ;;  %v977_v35 = vld [vmem:[#allocation5 + $0xe0] ss:$8 sps:$4 sm:$0xff]  }
  0xc3   :  { %v980_v37 = vld [vmem:[#allocation5 + $0xf0] ss:$8 sps:$4 sm:$0xff]   ;;  %v373_v38 = vlaneseq }
  0xc4   :  { %v127_v42 = vsel %vm125_vm5, %v126_v40, %v1149_v36  ;;  %779 = vmatpush1.bf16.msra.mxu1 %v962_v26  ;;  %v978_v36 = vld [vmem:[#allocation5 + $0xf4] ss:$8 sps:$4 sm:$0xff]  }
  0xc5   :  { %v128_v43 = vadd.s32 %v127_v42, %v123_v41  ;;  %781 = vmatprep.subr.bf16.mxu1 %v963_v27  ;;  %v374_v39 = vshrl.u32 %v373_v38, 7  ;;  %v371_v41 = vld [vmem:[%s1184_s3] sm:$0x3] }
  0xc7   :  { %v129_v44 = vadd.s32 536870912, %v128_v43  ;;  %v375_v40 = vsub.s32 0, %v374_v39  ;;  %v379_v42 = vsub.s32 1, %v374_v39 }
  0xc8   :  { %783 = vmatpush1.bf16.msra.mxu1 %v965_v28 }
  0xc9   :  { %v130_v45 = vshrl.u32 %v129_v44, 30  ;;  %785 = vmatprep.subr.bf16.mxu1 %v966_v29  ;;  %v380_v44 = vrot.slane %v371_v41, %v379_v42 }
  0xcb   :  { %v131_v46 = vshll.u32 %v130_v45, 30  ;;  %v154_v3 = vsub.s32 4, %v130_v45 }
  0xcd   :  { %v132_v47 = vsub.s32 %v128_v43, %v131_v46  ;;  %v155_v6 = vsel %vm70_vm7, %v154_v3, %v130_v45  ;;  %v376_v43 = vrot.slane %v371_v41, %v375_v40 }
  0xce   :  { %v157_v8 = vsel %vm69_vm8, 0, %v155_v6 }
  0xcf   :  { %v134_v48 = vsub.s32 0, %v132_v47  ;;  %v161_v9 = vadd.s32 3, %v157_v8  ;;  %v265_v10 = vand.u32 3, %v157_v8 }
  0xd1   :  { %v667_v49 = vmin.u32 %v134_v48, %v132_v47  ;;  %v162_v11 = vand.u32 3, %v161_v9  ;;  %vm270_vm9 = vcmp.eq.s32.totalorder %v265_v10, 2  ;;  %vm267_vm11 = vcmp.eq.s32.totalorder %v265_v10, 0 }
  0xd2   :  { %vm266_vm13 = vcmp.lt.s32.totalorder %v265_v10, 2 }
  0xd3   :  { %v136_v50 = vclz %v667_v49  ;;  %vm167_vm10 = vcmp.eq.s32.totalorder %v162_v11, 2  ;;  %vm164_vm12 = vcmp.eq.s32.totalorder %v162_v11, 0  ;;  %vm163_vm14 = vcmp.lt.s32.totalorder %v162_v11, 2 }
  0xd5   :  { %v668_v51 = vadd.s32 4294967294, %v136_v50 }
  0xd7   :  { %vm669_vm6 = vcmp.lt.s32.totalorder %v668_v51, 0 }
  0xd8   :  { %v139_v52 = vsel %vm669_vm6, 0, %v668_v51 }
  0xd9   :  { %v140_v56 = vsub.s32 32, %v139_v52  ;;  %v144_v57 = vsub.s32 4294967266, %v139_v52  ;;  %v141_v58 = vshll.u32 %v132_v47, %v139_v52 }
  0xdb   :  { %v142_v59 = vshrl.u32 %v124_v54, %v140_v56  ;;  %v145_v60 = vadd.s32 127, %v144_v57 }
  0xdd   :  { %v143_v61 = vor.u32 %v142_v59, %v141_v58  ;;  %v146_v62 = vshll.u32 %v145_v60, 23 }
  0xdf   :  { %v147_v63 = vor.u32 4788187, %v146_v62  ;;  %v150_v1 = vcvt.s32.f32 %v143_v61  ;;  %v564_v61 = vld [vmem:[%s1186_s5] sm:$0x3] }
  0xe0   :  { %v569_v62 = vrot.slane %v564_v61, %v375_v40 }
  0xe1   :  { %v148_v0 = vand.u32 2147483647, %v147_v63  ;;  %v573_v63 = vrot.slane %v564_v61, %v379_v42 }
  0xe3   :  { %v151_v2 = vmul.f32 %v150_v1, %v148_v0 }
  0xe5   :  { %v152_v4 = vxor.u32 2147483648, %v151_v2 }
  0xe7   :  { %v153_v5 = vsel %vm70_vm7, %v152_v4, %v151_v2 }
  0xe8   :  { %v156_v7 = vsel %vm69_vm8, %v1142_v53, %v153_v5  ;;  %v968_v53 = vld [vmem:[#allocation5 + $0xb0] ss:$8 sps:$4 sm:$0xff]  }
  0xe9   :  { %981 = vcosq.f32 %v156_v7  ;;  %787 = vmatpush1.bf16.msra.mxu1 %v968_v53 }
  0xea   :  { %983 = vsinq.f32 %v156_v7  ;;  %789 = vmatprep.subr.bf16.mxu1 %v969_v30 }
  0xed   :  { %791 = vmatpush1.bf16.msra.mxu1 %v971_v31 }
  0xee   :  { %793 = vmatprep.subr.bf16.mxu1 %v972_v32 }
  0xf1   :  { %795 = vmatpush1.bf16.msra.mxu1 %v974_v33 }
  0xf2   :  { %797 = vmatprep.subr.bf16.mxu1 %v975_v34 }
  0xf3   :  { %v982_v12 = vpop.eup %981 }
  0xf4   :  { %v984_v13 = vpop.eup %983  ;;  %v168_v14 = vxor.u32 2147483648, %v982_v12 }
  0xf5   :  { %v165_v15 = vxor.u32 2147483648, %v984_v13  ;;  %799 = vmatpush1.bf16.msra.mxu1 %v977_v35 }
  0xf6   :  { %v272_v16 = vsel %vm270_vm9, %v168_v14, %v984_v13  ;;  %v169_v55 = vsel %vm167_vm10, %v168_v14, %v984_v13  ;;  %801 = vmatprep.subr.bf16.mxu1 %v978_v36 }
  0xf7   :  { %v269_v17 = vsel %vm267_vm11, %v982_v12, %v165_v15  ;;  %v166_v18 = vsel %vm164_vm12, %v982_v12, %v165_v15 }
  0xf8   :  { %v273_v19 = vsel %vm266_vm13, %v269_v17, %v272_v16  ;;  %v170_v20 = vsel %vm163_vm14, %v166_v18, %v169_v55 }
  0xf9   :  { %v274_v21 = vsel %vm160_vm15, nan, %v273_v19  ;;  %v171_v22 = vsel %vm160_vm15, nan, %v170_v20  ;;  %803 = vmatpush1.bf16.msra.mxu1 %v980_v37 }
  0xfa   :  { %447 = vmatprep.mubr.f32.mxu0 %v274_v21 }
  0xfb   :  { %448 = vmatmul.mubr.f32.vlgmr.msra.gmra.mrb[0].mxu0 %v171_v22 }
 0x1ce   :  { %v449_v45 = vpop.f32.mrb[0].mxu0 }
 0x1cf   :  { %v450_v46 = vadd.f32 %v449_v45, %v376_v43  ;;  %v451_v47 = vpop.f32.mrb[1].mxu0 }
 0x1d0   :  { %v452_v48 = vadd.f32 %v451_v47, %v380_v44 }
 0x1d1   :  { %v674_v49 = vmul.f32 -1.442695, %v450_v46 }
 0x1d2   :  { %v675_v50 = vmul.f32 -1.442695, %v452_v48 }
 0x1d3   :  { %985 = vpow2.f32 %v674_v49 }
 0x1d4   :  { %987 = vpow2.f32 %v675_v50 }
 0x1dd   :  { %v986_v51 = vpop.eup %985 }
 0x1de   :  { %v988_v52 = vpop.eup %987  ;;  %v460_v54 = vadd.f32 1.0, %v986_v51 }
 0x1df   :  { %v461_v56 = vadd.f32 1.0, %v988_v52 }
 0x1e0   :  { %989 = vrcp.f32 %v460_v54 }
 0x1e1   :  { %991 = vrcp.f32 %v461_v56 }
 0x1ea   :  { %v990_v57 = vpop.eup %989 }
 0x1eb   :  { %v992_v58 = vpop.eup %991  ;;  %v466_v60 = vmul.f32 %v990_v57, %v450_v46 }
 0x1ec   :  { %v467_v59 = vmul.f32 %v992_v58, %v452_v48 }
 0x1ee   :  { %640 = vmatprep.mubr.f32.mxu1 %v467_v59 }
 0x1ef   :  { %641 = vmatmul.mubr.f32.vlgmr.msra.gmra.mrb[0].mxu1 %v466_v60 }
 0x2c2   :  { %v642_v0 = vpop.f32.mrb[0].mxu1 }
 0x2c3   :  { %v643_v1 = vadd.f32 %v642_v0, %v569_v62  ;;  %v644_v2 = vpop.f32.mrb[1].mxu1 }
 0x2c4   :  { %v645_v3 = vadd.f32 %v644_v2, %v573_v63 }
 0x2c5   :  { %647 = vst [vmem:[#allocation7] sm:$0xff] %v643_v1 }
 0x2c6   :  { %648 = vst [vmem:[#allocation7 + $0x8] sm:$0xff] %v645_v3 }
 0x2c7   :  { %1048 = shalt.err (!%p1045_p6)
}
 0x2c8   :  { %s1049_s30 = scalar_lea.hbm %s1187_s6, 256 }
 0x2c9   :  { %p1050_p7 = scmp.ne.s32.totalorder %s1187_s6, %s1049_s30  ;;  %p1053_p8 = scmp.lt.u32.totalorder %s1049_s30, %s1187_s6 }
 0x2cb   :  { %p1055_p9 = pnand %p1053_p8, %p1050_p7 }
 0x2cd   :  { %1058 = shalt.err (!%p1055_p9)
}
 0x2ce   :  { %658 = dma.vmem_to_hbm [thread:$0]  %s656_s27, 256, %s1187_s6, [#allocation4]  }
 0x2cf   :  { %1063 = dma.done.wait [#allocation4], 256  }
 0x2d0   :  { %1064 = vsyncadd [#allocation4], 4294967040 }
 0x2d1   :  { %662 = vsyncpa [#allocation3], 1 }
 0x2d2   :  { %663 = vsyncpa [#allocation6], 1 }
 0x2d3   :  { %664 = vsyncpa [#allocation4], 1 }

</bundles_post_ra>
